<compile_context>
chip_gen: v7x
topology: tpu7x:2x2x1
jax: 0.10.0
libtpu: 0.0.40
codegen_flags: <defaults>
</compile_context>

<pallas_src>
import functools

import jax
import jax.numpy as jnp
from jax.experimental import pallas as pl
from jax.experimental.pallas import tpu as pltpu


def attention_kernel(enc_ref, h_ref, vpack_ref, c_ref, ctx_ref):
    """enc (B,S,H), h (B,H), vpack (2,H)=[v_enc; v_h] in VMEM; c (1,) in SMEM."""
    enc = enc_ref[...]                                              # (B, S, H)
    h = h_ref[...]                                                  # (B, H)
    v_enc = vpack_ref[0:1, :]                                       # (1, H)
    v_h = vpack_ref[1:2, :]                                         # (1, H)
    c = c_ref[0]                                                    # scalar

    # Pre-softmax scores (exact collapse of match1->match2->match3->to_weight):
    #   score[b, s] = enc[b, s, :].v_enc + h[b, :].v_h + c
    s_enc = jnp.sum(enc * v_enc[None, :, :], axis=-1)               # (B, S)
    s_h = jnp.sum(h * v_h, axis=-1, keepdims=True)                  # (B, 1)
    aw = s_enc + s_h + c                                            # (B, S)

    # Softmax over the sequence axis (EUP exp, approx-reciprocal normalize).
    aw = aw - jnp.max(aw, axis=1, keepdims=True)
    aw = jnp.exp(aw)
    aw = aw * pl.reciprocal(jnp.sum(aw, axis=1, keepdims=True), approx=True)

    # context = bmm(aw (B,1,S), enc (B,S,H)).squeeze(1) as a weighted sum.
    ctx = jnp.sum(aw[:, :, None] * enc, axis=1)                     # (B, H)
    ctx_ref[...] = ctx.astype(ctx_ref.dtype)


def fold_params(params):
    """Fold W1/W2/W3/wv/b1/b2/b3 into v_enc, v_h (packed (2,H)) and scalar c.

    Exact because the reference has no nonlinearities between its Linears.
    """
    H = params["w2"].shape[0]
    hi = jax.lax.Precision.HIGHEST
    wv_vec = params["wv"].reshape(H)                                 # (H,)
    v3 = jnp.dot(params["w3"], wv_vec, precision=hi)                 # (H,)
    v23 = jnp.dot(params["w2"], v3, precision=hi)                    # (H,)
    v_enc = jnp.dot(params["w1"][:H], v23, precision=hi)             # (H,)
    v_h = jnp.dot(params["w1"][H:], v23, precision=hi)               # (H,)
    c = (jnp.dot(params["b1"].reshape(H), v23, precision=hi)
         + jnp.dot(params["b2"].reshape(H), v3, precision=hi)
         + jnp.dot(params["b3"].reshape(H), wv_vec, precision=hi))   # scalar
    return {
        "vpack": jnp.stack([v_enc, v_h]).astype(jnp.float32),        # (2, H)
        "c": jnp.reshape(c, (1,)).astype(jnp.float32),               # (1,)
    }


def attention_forward(folded, hidden_state, encoder_outputs):
    """hidden_state: (1, B, H); encoder_outputs: (B, S, H) -> context (B, H)."""
    B, S, H = encoder_outputs.shape
    h = hidden_state.reshape(B, H).astype(jnp.float32)

    vmem = pl.BlockSpec(memory_space=pltpu.MemorySpace.VMEM)
    smem = pl.BlockSpec(memory_space=pltpu.MemorySpace.SMEM)

    return pl.pallas_call(
        attention_kernel,
        out_shape=jax.ShapeDtypeStruct((B, H), jnp.float32),
        in_specs=[vmem, vmem, vmem, smem],
        out_specs=vmem,
    )(encoder_outputs.astype(jnp.float32), h, folded["vpack"], folded["c"])


def attention_reference(params, hidden_state, encoder_outputs):
    """Pure-JAX replica of the PyTorch AttentionLayer.forward (for checking)."""
    B, S, H = encoder_outputs.shape
    h = jnp.broadcast_to(hidden_state.reshape(B, 1, H), (B, S, H))
    m = jnp.concatenate([encoder_outputs, h], axis=2).reshape(-1, 2 * H)
    x = m @ params["w1"] + params["b1"]
    x = x @ params["w2"] + params["b2"]
    x = x @ params["w3"] + params["b3"]
    aw = jnp.sum(x * params["wv"], axis=-1).reshape(B, S)
    aw = jax.nn.softmax(aw, axis=1)
    return jnp.einsum("bs,bsh->bh", aw, encoder_outputs)


def init_params(key, hidden_size):
    """PyTorch-style nn.Linear uniform(-1/sqrt(fan_in), 1/sqrt(fan_in)) init.

    Weights are stored transposed, i.e. (in_features, out_features).
    """
    def lin(k, fan_in, shape):
        bound = float(fan_in) ** -0.5
        return jax.random.uniform(k, shape, jnp.float32, -bound, bound)

    H = hidden_size
    ks = jax.random.split(key, 7)
    return {
        # match1: 2H -> H ; match2/match3: H -> H ; to_weight: H -> 1 (no bias)
        "w1": lin(ks[0], 2 * H, (2 * H, H)), "b1": lin(ks[1], 2 * H, (1, H)),
        "w2": lin(ks[2], H, (H, H)),         "b2": lin(ks[3], H, (1, H)),
        "w3": lin(ks[4], H, (H, H)),         "b3": lin(ks[5], H, (1, H)),
        "wv": lin(ks[6], H, (1, H)),
    }


if __name__ == "__main__":
    B, S, H = 2, 8, 32          # batch, encoder seq len, hidden size

    key = jax.random.PRNGKey(0)
    kp, ke, kh = jax.random.split(key, 3)
    params = init_params(kp, H)
    folded = fold_params(params)        # one-time parameter folding

    encoder_outputs = jax.random.normal(ke, (B, S, H), jnp.float32)
    hidden_state = jax.random.normal(kh, (1, B, H), jnp.float32)

    fwd = jax.jit(functools.partial(attention_forward, folded))
    context = fwd(hidden_state, encoder_outputs)
    jax.block_until_ready(context)
    assert context.shape == (B, H)

    # Numerical sanity check against the pure-JAX reference (loose tolerance:
    # approx reciprocal in the kernel + reduced-precision dots in the ref).
    ref = attention_reference(params, hidden_state, encoder_outputs)
    max_err = float(jnp.max(jnp.abs(context - ref)))
    assert jnp.allclose(context, ref, rtol=2e-2, atol=2e-2), max_err

    print("KERNEL_OK")
</pallas_src>

<mosaic_0001>
module attributes {stable_mosaic.version = 11 : i64} {
  func.func @attention_kernel(%arg0: memref<2x8x32xf32, #tpu.memory_space<vmem>>, %arg1: memref<2x32xf32, #tpu.memory_space<vmem>>, %arg2: memref<2x32xf32, #tpu.memory_space<vmem>>, %arg3: memref<1xf32, #tpu.memory_space<smem>>, %arg4: memref<2x32xf32, #tpu.memory_space<vmem>>) attributes {dimension_semantics = [], scalar_prefetch = 0 : i64, scratch_operands = 0 : i64, tpu.core_type = #tpu.core_type<tc>} {
    %c0 = arith.constant 0 : index
    %c0_0 = arith.constant 0 : index
    %c0_1 = arith.constant 0 : index
    %0 = vector.load %arg0[%c0, %c0_0, %c0_1] : memref<2x8x32xf32, #tpu.memory_space<vmem>>, vector<2x8x32xf32>
    %c0_2 = arith.constant 0 : index
    %c0_3 = arith.constant 0 : index
    %1 = vector.load %arg1[%c0_2, %c0_3] : memref<2x32xf32, #tpu.memory_space<vmem>>, vector<2x32xf32>
    %c0_4 = arith.constant 0 : index
    %c0_5 = arith.constant 0 : index
    %2 = vector.load %arg2[%c0_4, %c0_5] : memref<2x32xf32, #tpu.memory_space<vmem>>, vector<1x32xf32>
    %c1 = arith.constant 1 : index
    %c0_6 = arith.constant 0 : index
    %3 = vector.load %arg2[%c1, %c0_6] : memref<2x32xf32, #tpu.memory_space<vmem>>, vector<1x32xf32>
    %c0_7 = arith.constant 0 : index
    %4 = memref.load %arg3[%c0_7] : memref<1xf32, #tpu.memory_space<smem>>
    %5 = vector.shape_cast %2 : vector<1x32xf32> to vector<1x1x32xf32>
    %6 = vector.broadcast %5 : vector<1x1x32xf32> to vector<2x8x32xf32>
    %7 = arith.mulf %0, %6 : vector<2x8x32xf32>
    %cst = arith.constant dense<0.000000e+00> : vector<2x8xf32>
    %8 = vector.multi_reduction <add>, %7, %cst [2] : vector<2x8x32xf32> to vector<2x8xf32>
    %9 = vector.broadcast %3 : vector<1x32xf32> to vector<2x32xf32>
    %10 = arith.mulf %1, %9 : vector<2x32xf32>
    %cst_8 = arith.constant dense<0.000000e+00> : vector<2xf32>
    %11 = vector.multi_reduction <add>, %10, %cst_8 [1] : vector<2x32xf32> to vector<2xf32>
    %12 = vector.shape_cast %11 : vector<2xf32> to vector<2x1xf32>
    %13 = vector.broadcast %12 : vector<2x1xf32> to vector<2x8xf32>
    %14 = arith.addf %8, %13 : vector<2x8xf32>
    %15 = vector.broadcast %4 : f32 to vector<2x8xf32>
    %16 = arith.addf %14, %15 : vector<2x8xf32>
    %cst_9 = arith.constant dense<0xFF800000> : vector<2xf32>
    %17 = vector.multi_reduction <maximumf>, %16, %cst_9 [1] : vector<2x8xf32> to vector<2xf32>
    %18 = vector.shape_cast %17 : vector<2xf32> to vector<2x1xf32>
    %19 = vector.broadcast %18 : vector<2x1xf32> to vector<2x8xf32>
    %20 = arith.subf %16, %19 : vector<2x8xf32>
    %21 = math.exp %20 : vector<2x8xf32>
    %cst_10 = arith.constant dense<0.000000e+00> : vector<2xf32>
    %22 = vector.multi_reduction <add>, %21, %cst_10 [1] : vector<2x8xf32> to vector<2xf32>
    %23 = vector.shape_cast %22 : vector<2xf32> to vector<2x1xf32>
    %24 = tpu.reciprocal %23 {approx = true} : vector<2x1xf32> -> vector<2x1xf32>
    %25 = vector.broadcast %24 : vector<2x1xf32> to vector<2x8xf32>
    %26 = arith.mulf %21, %25 : vector<2x8xf32>
    %27 = vector.shape_cast %26 : vector<2x8xf32> to vector<2x8x1xf32>
    %28 = vector.broadcast %27 : vector<2x8x1xf32> to vector<2x8x32xf32>
    %29 = arith.mulf %28, %0 : vector<2x8x32xf32>
    %cst_11 = arith.constant dense<0.000000e+00> : vector<2x32xf32>
    %30 = vector.multi_reduction <add>, %29, %cst_11 [1] : vector<2x8x32xf32> to vector<2x32xf32>
    %c0_12 = arith.constant 0 : index
    %c0_13 = arith.constant 0 : index
    %31 = vector.load %arg4[%c0_12, %c0_13] : memref<2x32xf32, #tpu.memory_space<vmem>>, vector<2x32xf32>
    tpu.vector_store %arg4[%c0_12, %c0_13], %30 {strides = array<i32>} : memref<2x32xf32, #tpu.memory_space<vmem>>, vector<2x32xf32>,
    return
  }
}

</mosaic_0001>

<bundles_post_ra>
// kernel: attention_forward.1
= control target key start
LH: loop header
LB: loop body
LE: loop exit
PB: predicated region body
PF: predicated region fallthrough
CT: control target
= control target key end

     0   :  { %10 = vsyncpa [#allocation4], 0  ;;  %s348_s0 = inlined_call_operand.hbm [shape: f32[2,8,32], index: 0, kind: input, shape index: {}]   ;;  %s349_s1 = inlined_call_operand.vmem [shape: f32[2,32], index: 1, kind: input, shape index: {}]   ;;  %s350_s2 = inlined_call_operand.vmem [shape: f32[2,32], index: 2, kind: input, shape index: {}]   ;;  %s351_s3 = inlined_call_operand.<no memory space> [shape: f32[1], index: 3, kind: input, shape index: {}]   ;;  %s352_s4 = inlined_call_operand.hbm [shape: f32[2,32], index: 4, kind: output, shape index: {}]  }
   0x1   :  { %11 = vsyncpa [#allocation5], 0  ;;  %s263_s15 = smov [#allocation3]   ;;  %s215_s19 = scalar_lea.hbm %s348_s0, 256 }
   0x2   :  { %s17_s16 = sshll.u32 %s263_s15, 4  ;;  %p216_p0 = scmp.ne.s32.totalorder %s348_s0, %s215_s19  ;;  %s18_s16 = int_to_ptr.vmem [resolvable:$true] %s17_s16 }
   0x3   :  { %p219_p1 = scmp.lt.u32.totalorder %s215_s19, %s348_s0 }
   0x5   :  { %p221_p2 = pnand %p219_p1, %p216_p0 }
   0x7   :  { %224 = shalt.err (!%p221_p2)
}
   0x8   :  { %s225_s24 = scalar_lea.vmem %s18_s16, 256  ;;  %p230_p4 = scmp.lt.s32.totalorder %s18_s16, %s18_s16 }
   0x9   :  { %p226_p3 = scmp.ne.s32.totalorder %s18_s16, %s225_s24  ;;  %p231_p5 = scmp.lt.s32.totalorder %s225_s24, %s225_s24 }
   0xb   :  { %p232_p6 = por %p231_p5, %p230_p4 }
   0xd   :  { %p233_p7 = pnand %p232_p6, %p226_p3 }
   0xf   :  { %236 = shalt.err (!%p233_p7)
}
  0x10   :  { %s264_s25 = smov 128   ;;  %s265_s26 = smov 8  }
  0x11   :  { %23 = dma.hbm_to_vmem [thread:$0]  %s348_s0, 256, %s18_s16, [#allocation4], %s264_s25, %s264_s25, %s265_s26  }
  0x12   :  { %259 = dma.done.wait [#allocation4], 256  }
  0x13   :  { %260 = vsyncadd [#allocation4], 4294967040  ;;  %v35_v0 = vld [vmem:[%s349_s1] sm:$0x3]  ;;  %vm57_vm0 = vcmask 254976   ;;  %v311_v2 = vld [vmem:[#allocation3 + $0x8] sm:$0xff]  ;;  %v62_v11 = vlaneseq  ;;  %v74_v21 = vstv %s351_s3 }
  0x14   :  { %v201_v1 = vld [vmem:[%s350_s2 + $0x1] ss:$0 sm:$0xff]  ;;  %v200_v4 = vld [vmem:[%s350_s2] ss:$0 sm:$0xff]  ;;  %vm45_vm1 = vcmask 261120   ;;  %v266_v12 = vmov 0  }
  0x15   :  { %v56_v3 = vmul.f32 %v201_v1, %v35_v0  ;;  %v316_v5 = vld [vmem:[#allocation3] sm:$0xff]  ;;  %v44_v6 = vmul.f32 %v200_v4, %v311_v2  ;;  %208 = vset.pattern.permute.xlu0 %v266_v12  ;;  %207 = vset.pattern.permute.xlu1 %v266_v12  ;;  %v63_v13 = vshrl.u32 %v62_v11, 7  ;;  %v86_v14 = vand.u32 127, %v62_v11  ;;  %s267_s2 = smov [#allocation6]  }
  0x16   :  { %v43_v7 = vmul.f32 %v200_v4, %v316_v5  ;;  %vm95_vm2 = vcmask 1041409   ;;  %vm98_vm3 = vcmask 58368   ;;  %s191_s3 = sshll.u32 %s267_s2, 4  ;;  %s192_s3 = int_to_ptr.vmem [resolvable:$true] %s191_s3 }
  0x17   :  { %v58_v8 = vsel %vm57_vm0, %v56_v3, 0.0  ;;  %v49_v9 = vsel %vm45_vm1, %v44_v6, 0.0  ;;  %v89_v15 = vsub.s32 %v86_v14, %v63_v13  ;;  %v68_v16 = vsub.s32 1, %v63_v13  ;;  %s237_s9 = scalar_lea.vmem %s192_s3, 32  ;;  %p242_p9 = scmp.lt.s32.totalorder %s192_s3, %s192_s3 }
  0x18   :  { %59 = vadd.xlane.f32.xlu0 %v58_v8  ;;  %50 = vadd.xlane.f32.xlu1 %v49_v9  ;;  %v46_v10 = vsel %vm45_vm1, %v43_v7, 0.0  ;;  %v64_v17 = vsub.s32 0, %v63_v13  ;;  %p238_p8 = scmp.ne.s32.totalorder %s192_s3, %s237_s9  ;;  %p243_p10 = scmp.lt.s32.totalorder %s237_s9, %s237_s9 }
  0x1a   :  { %p244_p11 = por %p243_p10, %p242_p9 }
  0x1c   :  { %47 = vadd.xlane.f32.xlu0 %v46_v10  ;;  %p245_p12 = pnand %p244_p11, %p238_p8 }
  0xa5   :  { %v60_v18 = vpop.xlane.xlu0 %59  ;;  %v51_v20 = vpop.xlane.xlu1 %50 }
  0xa6   :  { %v69_v19 = vrot.slane %v60_v18, %v68_v16  ;;  %v65_v22 = vrot.slane %v60_v18, %v64_v17 }
  0xa8   :  { %v73_v23 = vadd.f32 %v69_v19, %v51_v20 }
  0xa9   :  { %v48_v24 = vpop.xlane.xlu0 %47 }
  0xaa   :  { %v76_v25 = vadd.f32 %v74_v21, %v73_v23  ;;  %v72_v26 = vadd.f32 %v65_v22, %v48_v24 }
  0xac   :  { %v75_v27 = vadd.f32 %v74_v21, %v72_v26  ;;  %83 = vperm.xlu0 %208, %v76_v25  }
  0xae   :  { %80 = vperm.xlu1 %207, %v75_v27  }
 0x12b   :  { %v84_v28 = vpop.permute.xlu0 %83 }
 0x12c   :  { %v94_v30 = vrot.slane %v84_v28, %v89_v15 }
 0x12d   :  { %v81_v29 = vpop.permute.xlu1 %80 }
 0x12e   :  { %v90_v31 = vrot.slane %v81_v29, %v89_v15 }
 0x130   :  { %v96_v32 = vsel %vm95_vm2, %v94_v30, %v90_v31 }
 0x131   :  { %v99_v33 = vsel %vm98_vm3, %v96_v32, -inf }
 0x132   :  { %100 = vmax.xlane.f32.xlu1 %v99_v33 }
 0x1bf   :  { %v101_v34 = vpop.xlane.xlu1 %100 }
 0x1c0   :  { %v106_v35 = vrot.slane %v101_v34, %v64_v17  ;;  %v110_v36 = vrot.slane %v101_v34, %v68_v16 }
 0x1c2   :  { %v113_v37 = vsub.f32 %v75_v27, %v106_v35  ;;  %v114_v38 = vsub.f32 %v76_v25, %v110_v36 }
 0x1c4   :  { %v115_v39 = vmul.f32 1.442695, %v113_v37  ;;  %v117_v40 = vmul.f32 1.442695, %v114_v38 }
 0x1c6   :  { %209 = vpow2.f32 %v115_v39 }
 0x1c7   :  { %211 = vpow2.f32 %v117_v40 }
 0x1d0   :  { %v210_v41 = vpop.eup %209 }
 0x1d1   :  { %122 = vperm.xlu0 %208, %v210_v41   ;;  %v212_v42 = vpop.eup %211 }
 0x1d5   :  { %125 = vperm.xlu0 %208, %v212_v42  }
 0x250   :  { %v123_v43 = vpop.permute.xlu0 %122 }
 0x251   :  { %v130_v45 = vrot.slane %v123_v43, %v89_v15 }
 0x254   :  { %v126_v44 = vpop.permute.xlu0 %125 }
 0x255   :  { %v134_v46 = vrot.slane %v126_v44, %v89_v15 }
 0x257   :  { %v135_v47 = vsel %vm95_vm2, %v134_v46, %v130_v45 }
 0x258   :  { %v137_v48 = vsel %vm98_vm3, %v135_v47, 0.0 }
 0x259   :  { %138 = vadd.xlane.f32.xlu1 %v137_v48 }
 0x2e6   :  { %v139_v49 = vpop.xlane.xlu1 %138 }
 0x2e7   :  { %213 = vrcp.f32 %v139_v49 }
 0x2f1   :  { %v214_v50 = vpop.eup %213 }
 0x2f2   :  { %v149_v51 = vrot.slane %v214_v50, %v68_v16  ;;  %v145_v52 = vrot.slane %v214_v50, %v64_v17 }
 0x2f4   :  { %v153_v53 = vmul.f32 %v212_v42, %v149_v51  ;;  %v152_v54 = vmul.f32 %v210_v41, %v145_v52 }
 0x2f6   :  { %161 = vperm.xlu1 %207, %v153_v53   ;;  %156 = vperm.xlu0 %208, %v152_v54  }
 0x375   :  { %v162_v55 = vpop.permute.xlu1 %161  ;;  %v157_v56 = vpop.permute.xlu0 %156 }
 0x376   :  { %v165_v57 = vmul.f32 %v162_v55, %v311_v2  ;;  %v164_v58 = vmul.f32 %v157_v56, %v316_v5 }
 0x378   :  { %v173_v59 = vsel %vm45_vm1, %v165_v57, 0.0  ;;  %v166_v60 = vsel %vm45_vm1, %v164_v58, 0.0 }
 0x379   :  { %v174_v61 = vrot.slane %v173_v59, 4  ;;  %v167_v62 = vrot.slane %v166_v60, 4 }
 0x37b   :  { %v175_v63 = vadd.f32 %v174_v61, %v173_v59  ;;  %v168_v0 = vadd.f32 %v167_v62, %v166_v60 }
 0x37d   :  { %v176_v1 = vrot.slane %v175_v63, 2  ;;  %v169_v3 = vrot.slane %v168_v0, 2 }
 0x37f   :  { %v177_v4 = vadd.f32 %v176_v1, %v175_v63  ;;  %v170_v6 = vadd.f32 %v169_v3, %v168_v0 }
 0x381   :  { %v178_v7 = vrot.slane %v177_v4, 1  ;;  %v171_v8 = vrot.slane %v170_v6, 1 }
 0x383   :  { %v179_v9 = vadd.f32 %v178_v7, %v177_v4  ;;  %v172_v2 = vadd.f32 %v171_v8, %v170_v6 }
 0x385   :  { %v182_v5 = vsel %vm95_vm2, %v179_v9, %v172_v2 }
 0x386   :  { %184 = vst.msk [vmem:[#allocation6] sm:$0x3] %vm57_vm0, %v182_v5 }
 0x387   :  { %248 = shalt.err (!%p245_p12)
}
 0x388   :  { %s249_s12 = scalar_lea.hbm %s352_s4, 32 }
 0x389   :  { %p250_p13 = scmp.ne.s32.totalorder %s352_s4, %s249_s12  ;;  %p253_p0 = scmp.lt.u32.totalorder %s249_s12, %s352_s4 }
 0x38b   :  { %p255_p1 = pnand %p253_p0, %p250_p13 }
 0x38d   :  { %258 = shalt.err (!%p255_p1)
}
 0x38e   :  { %194 = dma.vmem_to_hbm [thread:$0]  %s192_s3, 32, %s352_s4, [#allocation5]  }
 0x38f   :  { %261 = dma.done.wait [#allocation5], 32  }
 0x390   :  { %262 = vsyncadd [#allocation5], 4294967264 }
 0x391   :  { %198 = vsyncpa [#allocation4], 1 }
 0x392   :  { %199 = vsyncpa [#allocation5], 1 }

</bundles_post_ra>
